<compile_context>
chip_gen: v7x
topology: tpu7x:2x2x1
jax: 0.10.0
libtpu: 0.0.40
codegen_flags: <defaults>
</compile_context>

<pallas_src>
import jax
import jax.numpy as jnp
from jax.experimental import pallas as pl
from jax.experimental.pallas import tpu as pltpu


# ---------------------------------------------------------------------------
# Fused SALayer kernel (one (1, C, t_hw) block of pixels, NCHW layout)
# ---------------------------------------------------------------------------

def _salayer_kernel(x_ref, w1_ref, w2_ref, o_ref):
    """x_ref : (1, C, t_hw)  in-dtype   input activations
       w1_ref: (Cr, C)       bf16       conv1 1x1 weight (PyTorch (out,in) layout)
       w2_ref: (C, Cr)       bf16       conv2 1x1 weight
       o_ref : (1, C, t_hw)  in-dtype   x * sigmoid(W2 @ relu(W1 @ x))
    """
    x = x_ref[0].astype(jnp.float32)                 # (C, t_hw) f32 for the scale
    xb = x.astype(jnp.bfloat16)                      # bf16 MXU operand
    h = jnp.dot(w1_ref[...], xb,                     # (Cr, t_hw), f32 accumulation
                preferred_element_type=jnp.float32)
    h = jnp.maximum(h, 0.0)                          # ReLU (VPU)
    y = jnp.dot(w2_ref[...], h.astype(jnp.bfloat16),  # (C, t_hw)
                preferred_element_type=jnp.float32)
    y = jax.nn.sigmoid(y)                            # EUP transcendental slot
    o_ref[0] = (x * y).astype(o_ref.dtype)           # per-pixel, per-channel scale


def salayer_forward(x, w1, w2, *, max_tile_pixels=2048):
    """NCHW-native fused SALayer forward.

    x : (B, C, H, W)  f32 or bf16 (output dtype matches input dtype)
    w1: (C//r, C)     conv1 weight, squeezed from PyTorch (out_c, in_c, 1, 1)
    w2: (C, C//r)     conv2 weight
    """
    B, C, H, W = x.shape
    Cr = w1.shape[0]
    HW = H * W
    x3 = x.reshape(B, C, HW)                         # free: contiguous reshape

    # Pixel tile on the lane axis: full extent, or a multiple of 128.
    if HW <= max_tile_pixels:
        thw = HW                                     # full-extent block: always legal
    else:
        thw = (max_tile_pixels // 128) * 128
    # v7x megacore: keep >= 2 grid steps when possible so both TensorCores work.
    if B * pl.cdiv(HW, thw) < 2 and HW >= 256:
        thw = ((HW + 1) // 2 + 127) // 128 * 128
    grid = (B, pl.cdiv(HW, thw))
    # Ragged last tile (HW % thw != 0) is safe: compute is per-pixel and Pallas
    # drops out-of-bounds output writes. Do NOT reduce across pixels in-kernel.

    itemsize = jnp.dtype(x.dtype).itemsize
    cost = pl.CostEstimate(
        flops=4 * B * HW * C * Cr,                   # two matmuls
        transcendentals=B * HW * C,                  # sigmoid
        bytes_accessed=2 * B * HW * C * itemsize + 2 * (w1.size + w2.size),
    )

    out = pl.pallas_call(
        _salayer_kernel,
        out_shape=jax.ShapeDtypeStruct((B, C, HW), x.dtype),
        grid_spec=pltpu.PrefetchScalarGridSpec(
            num_scalar_prefetch=0,
            grid=grid,
            in_specs=[
                pl.BlockSpec((1, C, thw), lambda b, j: (b, 0, j)),  # x (pipelined)
                pl.BlockSpec((Cr, C), lambda b, j: (0, 0)),         # w1 resident
                pl.BlockSpec((C, Cr), lambda b, j: (0, 0)),         # w2 resident
            ],
            out_specs=pl.BlockSpec((1, C, thw), lambda b, j: (b, 0, j)),
        ),
        compiler_params=pltpu.CompilerParams(
            dimension_semantics=("parallel", "parallel"),            # megacore on v7x
        ),
        cost_estimate=cost,
    )(x3, w1.astype(jnp.bfloat16), w2.astype(jnp.bfloat16))

    return out.reshape(B, C, H, W)


# ---------------------------------------------------------------------------
# Pure-JAX reference (f32 end to end) for correctness checking
# ---------------------------------------------------------------------------

def salayer_ref(x, w1, w2):
    xf = x.astype(jnp.float32)
    h = jnp.maximum(jnp.einsum("rc,bchw->brhw", w1.astype(jnp.float32), xf), 0.0)
    y = jax.nn.sigmoid(jnp.einsum("cr,brhw->bchw", w2.astype(jnp.float32), h))
    return xf * y


# ---------------------------------------------------------------------------

if __name__ == "__main__":
    key = jax.random.PRNGKey(0)
    kx, k1, k2 = jax.random.split(key, 3)

    # SALayer(channel=128, reduction=4, bias=False); input B=2, 16x16 spatial (NCHW).
    B, C, H, W = 2, 128, 16, 16
    reduction = 4
    Cr = C // reduction

    x = jax.random.normal(kx, (B, C, H, W), jnp.float32)
    w1 = 0.05 * jax.random.normal(k1, (Cr, C), jnp.float32)   # conv1: C -> C/r
    w2 = 0.05 * jax.random.normal(k2, (C, Cr), jnp.float32)   # conv2: C/r -> C

    fwd = jax.jit(salayer_forward)
    out = fwd(x, w1, w2)
    jax.block_until_ready(out)

    ref = salayer_ref(x, w1, w2)

    assert out.shape == (B, C, H, W)
    assert bool(jnp.all(jnp.isfinite(out)))
    # bf16 MXU operands -> small expected rounding vs the f32 reference.
    max_err = float(jnp.max(jnp.abs(out - ref)))
    assert max_err < 2e-2, f"max abs error {max_err}"

    print("KERNEL_OK")
</pallas_src>

<mosaic_0001>
module attributes {stable_mosaic.version = 11 : i64} {
  func.func @_salayer_kernel(%arg0: i32, %arg1: i32, %arg2: memref<1x128x256xf32, #tpu.memory_space<vmem>>, %arg3: memref<32x128xbf16, #tpu.memory_space<vmem>>, %arg4: memref<128x32xbf16, #tpu.memory_space<vmem>>, %arg5: memref<1x128x256xf32, #tpu.memory_space<vmem>>) attributes {dimension_semantics = [#tpu.dimension_semantics<parallel>, #tpu.dimension_semantics<parallel>], iteration_bounds = array<i64: 2, 1>, scalar_prefetch = 0 : i64, scratch_operands = 0 : i64, tpu.core_type = #tpu.core_type<tc>, window_params = [{transform_indices = @transform_0, window_bounds = array<i64: 1, 128, 256>}, {pipeline_mode = #tpu.pipeline_mode<synchronous>, transform_indices = @transform_1, window_bounds = array<i64: 32, 128>}, {pipeline_mode = #tpu.pipeline_mode<synchronous>, transform_indices = @transform_2, window_bounds = array<i64: 128, 32>}, {transform_indices = @transform_3, window_bounds = array<i64: 1, 128, 256>}]} {
    %c0 = arith.constant 0 : index
    %c0_0 = arith.constant 0 : index
    %c0_1 = arith.constant 0 : index
    %0 = vector.load %arg2[%c0, %c0_0, %c0_1] : memref<1x128x256xf32, #tpu.memory_space<vmem>>, vector<1x128x256xf32>
    %1 = vector.shape_cast %0 : vector<1x128x256xf32> to vector<128x256xf32>
    %2 = arith.truncf %1 : vector<128x256xf32> to vector<128x256xbf16>
    %c0_2 = arith.constant 0 : index
    %c0_3 = arith.constant 0 : index
    %3 = vector.load %arg3[%c0_2, %c0_3] : memref<32x128xbf16, #tpu.memory_space<vmem>>, vector<32x128xbf16>
    %cst = arith.constant dense<0.000000e+00> : vector<32x256xf32>
    %4 = tpu.matmul %3, %2, %cst {dimension_numbers = #tpu.dot_dimension_numbers<[1], [0], [0], [1], [0, 0, 1, 1], [], []>} : vector<32x128xbf16>, vector<128x256xbf16>, vector<32x256xf32> -> vector<32x256xf32>
    %cst_4 = arith.constant 0.000000e+00 : f32
    %5 = vector.broadcast %cst_4 : f32 to vector<32x256xf32>
    %6 = arith.maximumf %4, %5 : vector<32x256xf32>
    %c0_5 = arith.constant 0 : index
    %c0_6 = arith.constant 0 : index
    %7 = vector.load %arg4[%c0_5, %c0_6] : memref<128x32xbf16, #tpu.memory_space<vmem>>, vector<128x32xbf16>
    %8 = arith.truncf %6 : vector<32x256xf32> to vector<32x256xbf16>
    %cst_7 = arith.constant dense<0.000000e+00> : vector<128x256xf32>
    %9 = tpu.matmul %7, %8, %cst_7 {dimension_numbers = #tpu.dot_dimension_numbers<[1], [0], [0], [1], [0, 0, 1, 1], [], []>} : vector<128x32xbf16>, vector<32x256xbf16>, vector<128x256xf32> -> vector<128x256xf32>
    %10 = arith.negf %9 : vector<128x256xf32>
    %11 = math.exp %10 : vector<128x256xf32>
    %cst_8 = arith.constant 1.000000e+00 : f32
    %12 = vector.broadcast %cst_8 : f32 to vector<128x256xf32>
    %13 = arith.addf %12, %11 : vector<128x256xf32>
    %14 = arith.divf %12, %13 : vector<128x256xf32>
    %15 = arith.mulf %1, %14 : vector<128x256xf32>
    %c0_9 = arith.constant 0 : index
    %c0_10 = arith.constant 0 : index
    %c0_11 = arith.constant 0 : index
    %16 = vector.load %arg5[%c0_9, %c0_10, %c0_11] : memref<1x128x256xf32, #tpu.memory_space<vmem>>, vector<1x128x256xf32>
    %17 = vector.shape_cast %16 : vector<1x128x256xf32> to vector<128x256xf32>
    %18 = vector.shape_cast %15 : vector<128x256xf32> to vector<1x128x256xf32>
    tpu.vector_store %arg5[%c0_9, %c0_10, %c0_11], %18 {strides = array<i32>} : memref<1x128x256xf32, #tpu.memory_space<vmem>>, vector<1x128x256xf32>,
    return
  }
  func.func @transform_0(%arg0: i32, %arg1: i32) -> (i32, i32, i32) {
    %c0_i32 = arith.constant 0 : i32
    %c0_i32_0 = arith.constant 0 : i32
    return %arg0, %c0_i32, %arg1 : i32, i32, i32
  }
  func.func @transform_1(%arg0: i32, %arg1: i32) -> (i32, i32) {
    %c0_i32 = arith.constant 0 : i32
    %c0_i32_0 = arith.constant 0 : i32
    %c0_i32_1 = arith.constant 0 : i32
    return %c0_i32, %c0_i32_0 : i32, i32
  }
  func.func @transform_2(%arg0: i32, %arg1: i32) -> (i32, i32) {
    %c0_i32 = arith.constant 0 : i32
    %c0_i32_0 = arith.constant 0 : i32
    %c0_i32_1 = arith.constant 0 : i32
    return %c0_i32, %c0_i32_0 : i32, i32
  }
  func.func @transform_3(%arg0: i32, %arg1: i32) -> (i32, i32, i32) {
    %c0_i32 = arith.constant 0 : i32
    %c0_i32_0 = arith.constant 0 : i32
    return %arg0, %c0_i32, %arg1 : i32, i32, i32
  }
}

</mosaic_0001>

<bundles_post_ra>
// kernel: salayer_forward.1
= control target key start
LH: loop header
LB: loop body
LE: loop exit
PB: predicated region body
PF: predicated region fallthrough
CT: control target
= control target key end

     0   :  { %s1152_s12 = smov 0   ;;  %s1154_s13 = smov 0   ;;  %s1445_s0 = inlined_call_operand.vmem [shape: f32[2,128,256], index: 0, kind: input, shape index: {}]   ;;  %s1446_s1 = inlined_call_operand.vmem [shape: bf16[32,128], index: 1, kind: input, shape index: {}]   ;;  %s1447_s2 = inlined_call_operand.vmem [shape: bf16[128,32], index: 2, kind: input, shape index: {}]   ;;  %s1448_s3 = inlined_call_operand.vmem [shape: f32[2,128,256], index: 3, kind: output, shape index: {}]  }
   0x1   :  { %s1156_s14 = smov 0  }
   0x2 LB: > { %s25_s15 = sadd.s32 1, %s1125_s13  ;;  %p881_p0 = scmp.ge.s32.totalorder %s1129_s14, 1  ;;  %s1129_s14 = sphi %s1156_s14, %s13_s14   ;;  %s1125_s13 = sphi %s1154_s13, %s1450_s13   ;;  %s1121_s12 = sphi %s1152_s12, %s1449_s12  }
   0x3   : > { %p27_p1 = scmp.ge.s32.totalorder %s25_s15, 2  ;;  %p158_p2 = scmp.lt.s32.totalorder %s1129_s14, 3 }
   0x5   : > { %s1452_s15 = smov (%p27_p1, %s25_s15), 0  ;;  %p159_p3 = pnand %p881_p0, %p158_p2 }
   0x6   : > { %p191_p4 = scmp.lt.s32.totalorder (!%p159_p3), %s1121_s12, 1  ;;  %v1131_v0 = vmov (!%p159_p3), 0   ;;  %v969_v49 = vld [vmem:[%s1446_s1] sm:$0xff] (!%p159_p3)   ;;  %v970_v50 = vld [vmem:[%s1446_s1 + $0x8] sm:$0xff] (!%p159_p3)   ;;  %vm396_vm0 = vcmask (!%p159_p3), 261120  }
   0x7   : > { %162 = sbr.rel (%p159_p3) target bundleno = 584 (0x248), region = 32  ;;  %307 = vmatprep.mubr.bf16.mxu0 (!%p159_p3), %v1131_v0  ;;  %463 = vmatprep.mubr.bf16.mxu1 (!%p159_p3), %v1131_v0 }
   0xe   : > { %s1454_s12 = smov (!%p191_p4, %s1121_s12), 1 }
   0xf   : > { %s938_s16 = sshll.u32 %s1454_s12, 8 }
  0x10   : > { %s1180_s19 = scalar_lea.vmem %s1445_s0, %s938_s16  ;;  %s1367_s20 = scalar_lea.vmem %s1448_s3, %s938_s16 }
  0x11   : > { %v1183_v1 = vld [vmem:[%s1180_s19 + $0x8] sm:$0xff]  ;;  %v1186_v2 = vld [vmem:[%s1180_s19 + $0x18] sm:$0xff]  ;;  %v1189_v3 = vld [vmem:[%s1180_s19] sm:$0xff] }
  0x12   : > { %v244_v4 = vpack.c.bf16 %v1186_v2, %v1183_v1  ;;  %v1194_v5 = vld [vmem:[%s1180_s19 + $0x10] sm:$0xff]  ;;  %v1197_v6 = vld [vmem:[%s1180_s19 + $0x28] sm:$0xff]  ;;  %v1200_v7 = vld [vmem:[%s1180_s19 + $0x38] sm:$0xff] }
  0x13   : > { %v243_v8 = vpack.c.bf16 %v1194_v5, %v1189_v3  ;;  %v246_v9 = vpack.c.bf16 %v1200_v7, %v1197_v6  ;;  %v1207_v10 = vld [vmem:[%s1180_s19 + $0x20] sm:$0xff]  ;;  %v1210_v11 = vld [vmem:[%s1180_s19 + $0x30] sm:$0xff]  ;;  %v1213_v12 = vld [vmem:[%s1180_s19 + $0x48] sm:$0xff] }
  0x14   : > { %275 = vmatprep.subr.bf16.mxu0 %v244_v4  ;;  %v1216_v13 = vld [vmem:[%s1180_s19 + $0x58] sm:$0xff]  ;;  %v245_v14 = vpack.c.bf16 %v1210_v11, %v1207_v10  ;;  %v1223_v16 = vld [vmem:[%s1180_s19 + $0x40] sm:$0xff]  ;;  %v1226_v17 = vld [vmem:[%s1180_s19 + $0x50] sm:$0xff] }
  0x15   : > { %276 = vmatpush1.bf16.msra.mxu0 %v243_v8  ;;  %v248_v15 = vpack.c.bf16 %v1216_v13, %v1213_v12  ;;  %v1229_v18 = vld [vmem:[%s1180_s19 + $0x68] sm:$0xff]  ;;  %v1232_v19 = vld [vmem:[%s1180_s19 + $0x78] sm:$0xff]  ;;  %v247_v20 = vpack.c.bf16 %v1226_v17, %v1223_v16  ;;  %v1239_v22 = vld [vmem:[%s1180_s19 + $0x60] sm:$0xff] }
  0x16   : > { %277 = vmatprep.subr.bf16.mxu0 %v246_v9  ;;  %v250_v21 = vpack.c.bf16 %v1232_v19, %v1229_v18  ;;  %v1242_v23 = vld [vmem:[%s1180_s19 + $0x70] sm:$0xff]  ;;  %v1245_v24 = vld [vmem:[%s1180_s19 + $0x88] sm:$0xff]  ;;  %v1248_v25 = vld [vmem:[%s1180_s19 + $0x98] sm:$0xff] }
  0x17   : > { %v249_v26 = vpack.c.bf16 %v1242_v23, %v1239_v22  ;;  %v252_v27 = vpack.c.bf16 %v1248_v25, %v1245_v24  ;;  %v1255_v28 = vld [vmem:[%s1180_s19 + $0x80] sm:$0xff]  ;;  %v1258_v29 = vld [vmem:[%s1180_s19 + $0x90] sm:$0xff]  ;;  %v1261_v30 = vld [vmem:[%s1180_s19 + $0xa8] sm:$0xff] }
  0x18   : > { %v1264_v31 = vld [vmem:[%s1180_s19 + $0xb8] sm:$0xff]  ;;  %v251_v32 = vpack.c.bf16 %v1258_v29, %v1255_v28  ;;  %v1271_v34 = vld [vmem:[%s1180_s19 + $0xa0] sm:$0xff]  ;;  %v1274_v35 = vld [vmem:[%s1180_s19 + $0xb0] sm:$0xff] }
  0x19   : > { %278 = vmatpush1.bf16.msra.mxu0 %v245_v14  ;;  %v254_v33 = vpack.c.bf16 %v1264_v31, %v1261_v30  ;;  %v1277_v36 = vld [vmem:[%s1180_s19 + $0xc8] sm:$0xff]  ;;  %v1280_v37 = vld [vmem:[%s1180_s19 + $0xd8] sm:$0xff]  ;;  %v253_v38 = vpack.c.bf16 %v1274_v35, %v1271_v34  ;;  %v1287_v40 = vld [vmem:[%s1180_s19 + $0xc0] sm:$0xff] }
  0x1a   : > { %279 = vmatprep.subr.bf16.mxu0 %v248_v15  ;;  %v256_v39 = vpack.c.bf16 %v1280_v37, %v1277_v36  ;;  %v1290_v41 = vld [vmem:[%s1180_s19 + $0xd0] sm:$0xff]  ;;  %v1293_v42 = vld [vmem:[%s1180_s19 + $0xe8] sm:$0xff]  ;;  %v1296_v43 = vld [vmem:[%s1180_s19 + $0xf8] sm:$0xff] }
  0x1b   : > { %v255_v44 = vpack.c.bf16 %v1290_v41, %v1287_v40  ;;  %v258_v45 = vpack.c.bf16 %v1296_v43, %v1293_v42  ;;  %v1303_v46 = vld [vmem:[%s1180_s19 + $0xe0] sm:$0xff]  ;;  %v1306_v47 = vld [vmem:[%s1180_s19 + $0xf0] sm:$0xff] }
  0x1c   : > { %v257_v48 = vpack.c.bf16 %v1306_v47, %v1303_v46 }
  0x1d   : > { %280 = vmatpush1.bf16.msra.mxu0 %v247_v20 }
  0x1e   : > { %281 = vmatprep.subr.bf16.mxu0 %v250_v21 }
  0x21   : > { %282 = vmatpush1.bf16.msra.mxu0 %v249_v26  ;;  %v971_v26 = vld [vmem:[%s1447_s2 + $0x8] sm:$0xff]  }
  0x22   : > { %283 = vmatprep.subr.bf16.mxu0 %v252_v27  ;;  %v977_v27 = vld [vmem:[%s1447_s2] sm:$0xff]  }
  0x25   : > { %284 = vmatpush1.bf16.msra.mxu0 %v251_v32  ;;  %v972_v32 = vld [vmem:[%s1447_s2 + $0x10] sm:$0xff]  }
  0x26   : > { %285 = vmatprep.subr.bf16.mxu0 %v254_v33  ;;  %v973_v33 = vld [vmem:[%s1447_s2 + $0x18] sm:$0xff]  }
  0x29   : > { %286 = vmatpush1.bf16.msra.mxu0 %v253_v38  ;;  %v974_v38 = vld [vmem:[%s1447_s2 + $0x20] sm:$0xff]  }
  0x2a   : > { %287 = vmatprep.subr.bf16.mxu0 %v256_v39  ;;  %v975_v39 = vld [vmem:[%s1447_s2 + $0x28] sm:$0xff]  }
  0x2d   : > { %288 = vmatpush1.bf16.msra.mxu0 %v255_v44  ;;  %v976_v44 = vld [vmem:[%s1447_s2 + $0x30] sm:$0xff]  }
  0x2e   : > { %289 = vmatprep.subr.bf16.mxu0 %v258_v45  ;;  %v978_v45 = vld [vmem:[%s1447_s2 + $0x38] sm:$0xff]  }
  0x31   : > { %290 = vmatpush1.bf16.msra.mxu0 %v257_v48 }
  0x34   : > { %308 = vmatmul.mubr.bf16.vlgmr.msra.gmra.mrb[0].mxu0 %v969_v49 }
  0x35   : > { %317 = vmatprep.mubr.bf16.mxu0 %v1131_v0 }
  0x3c   : > { %318 = vmatmul.mubr.bf16.gmra.mrb[4].mxu0 %v970_v50 }
  0x3d   : > { %453 = vmatprep.mubr.bf16.mxu0 %v1131_v0 }
 0x107   : > { %v309_v51 = vpop.f32.mrb[0].mxu0 }
 0x108   : > { %v311_v52 = vpop.f32.mrb[1].mxu0  ;;  %v328_v54 = vmax.f32 %v309_v51, 0.0 }
 0x109   : > { %v313_v53 = vpop.f32.mrb[2].mxu0  ;;  %v329_v57 = vmax.f32 %v311_v52, 0.0 }
 0x10a   : > { %v330_v55 = vmax.f32 %v313_v53, 0.0  ;;  %v315_v56 = vpop.f32.mrb[3].mxu0 }
 0x10b   : > { %v331_v58 = vmax.f32 %v315_v56, 0.0 }
 0x10c   : > { %v352_v59 = vpack.c.bf16 %v330_v55, %v328_v54 }
 0x10d   : > { %v353_v60 = vpack.c.bf16 %v331_v58, %v329_v57 }
 0x10f   : > { %v319_v61 = vpop.f32.mrb[4].mxu0  ;;  %421 = vmatprep.subr.bf16.mxu0 %v353_v60  ;;  %940 = vmatprep.subr.bf16.mxu1 %v353_v60 }
 0x110   : > { %v321_v62 = vpop.f32.mrb[5].mxu0  ;;  %422 = vmatpush1.bf16.msra.mxu0 %v352_v59  ;;  %942 = vmatpush1.bf16.msra.mxu1 %v352_v59  ;;  %v332_v4 = vmax.f32 %v319_v61, 0.0 }
 0x111   : > { %v323_v63 = vpop.f32.mrb[6].mxu0  ;;  %v333_v14 = vmax.f32 %v321_v62, 0.0 }
 0x112   : > { %v334_v8 = vmax.f32 %v323_v63, 0.0  ;;  %v325_v9 = vpop.f32.mrb[7].mxu0 }
 0x113   : > { %v335_v15 = vmax.f32 %v325_v9, 0.0 }
 0x114   : > { %v354_v20 = vpack.c.bf16 %v334_v8, %v332_v4 }
 0x115   : > { %v355_v21 = vpack.c.bf16 %v335_v15, %v333_v14 }
 0x117   : > { %423 = vmatprep.subr.bf16.mxu0 %v355_v21  ;;  %941 = vmatprep.subr.bf16.mxu1 %v355_v21 }
 0x118   : > { %424 = vmatpush1.bf16.msra.mxu0 %v354_v20  ;;  %943 = vmatpush1.bf16.msra.mxu1 %v354_v20 }
 0x11b   : > { %897 = vmatmul.mubr.msk.bf16.vlgmr.msra.gmra.mrb[0].mxu1 %vm396_vm0, %v971_v26  ;;  %896 = vmatmul.mubr.msk.bf16.vlgmr.msra.gmra.mrb[8].mxu0 %vm396_vm0, %v977_v27 }
 0x11c   : > { %473 = vmatprep.mubr.bf16.mxu1 %v1131_v0 }
 0x123   : > { %898 = vmatmul.mubr.msk.bf16.gmra.mrb[4].mxu1 %vm396_vm0, %v972_v32 }
 0x124   : > { %483 = vmatprep.mubr.bf16.mxu1 %v1131_v0 }
 0x12b   : > { %899 = vmatmul.mubr.msk.bf16.gmra.mrb[8].mxu1 %vm396_vm0, %v973_v33 }
 0x12c   : > { %493 = vmatprep.mubr.bf16.mxu1 %v1131_v0 }
 0x133   : > { %900 = vmatmul.mubr.msk.bf16.gmra.mrb[12].mxu1 %vm396_vm0, %v974_v38 }
 0x134   : > { %503 = vmatprep.mubr.bf16.mxu1 %v1131_v0 }
 0x13b   : > { %901 = vmatmul.mubr.msk.bf16.gmra.mrb[16].mxu1 %vm396_vm0, %v975_v39 }
 0x13c   : > { %513 = vmatprep.mubr.bf16.mxu1 %v1131_v0 }
 0x143   : > { %902 = vmatmul.mubr.msk.bf16.gmra.mrb[20].mxu1 %vm396_vm0, %v976_v44 }
 0x144   : > { %523 = vmatprep.mubr.bf16.mxu1 %v1131_v0 }
 0x14b   : > { %903 = vmatmul.mubr.msk.bf16.gmra.mrb[24].mxu1 %vm396_vm0, %v978_v45 }
 0x1ee   : > { %v465_v48 = vpop.f32.mrb[0].mxu1  ;;  %v455_v49 = vpop.f32.mrb[8].mxu0 }
 0x1ef   : > { %v908_v50 = vmul.f32 -1.442695, %v465_v48  ;;  %v467_v51 = vpop.f32.mrb[1].mxu1  ;;  %v457_v52 = vpop.f32.mrb[9].mxu0  ;;  %v904_v59 = vmul.f32 -1.442695, %v455_v49 }
 0x1f0   : > { %v909_v53 = vmul.f32 -1.442695, %v467_v51  ;;  %v469_v54 = vpop.f32.mrb[2].mxu1  ;;  %v459_v55 = vpop.f32.mrb[10].mxu0  ;;  %v905_v60 = vmul.f32 -1.442695, %v457_v52 }
 0x1f1   : > { %979 = vpow2.f32 %v908_v50  ;;  %v910_v56 = vmul.f32 -1.442695, %v469_v54  ;;  %v471_v57 = vpop.f32.mrb[3].mxu1  ;;  %v461_v58 = vpop.f32.mrb[11].mxu0  ;;  %v906_v61 = vmul.f32 -1.442695, %v459_v55 }
 0x1f2   : > { %981 = vpow2.f32 %v909_v53  ;;  %v911_v0 = vmul.f32 -1.442695, %v471_v57  ;;  %v907_v20 = vmul.f32 -1.442695, %v461_v58 }
 0x1f3   : > { %983 = vpow2.f32 %v910_v56 }
 0x1f4   : > { %985 = vpow2.f32 %v911_v0 }
 0x1f5   : > { %987 = vpow2.f32 %v904_v59 }
 0x1f6   : > { %v475_v62 = vpop.f32.mrb[4].mxu1  ;;  %989 = vpow2.f32 %v905_v60 }
 0x1f7   : > { %v912_v63 = vmul.f32 -1.442695, %v475_v62  ;;  %v477_v4 = vpop.f32.mrb[5].mxu1  ;;  %991 = vpow2.f32 %v906_v61 }
 0x1f8   : > { %v913_v8 = vmul.f32 -1.442695, %v477_v4  ;;  %v479_v9 = vpop.f32.mrb[6].mxu1 }
 0x1f9   : > { %993 = vpow2.f32 %v912_v63  ;;  %v914_v14 = vmul.f32 -1.442695, %v479_v9  ;;  %v481_v15 = vpop.f32.mrb[7].mxu1 }
 0x1fa   : > { %995 = vpow2.f32 %v913_v8  ;;  %v915_v21 = vmul.f32 -1.442695, %v481_v15 }
 0x1fb   : > { %v980_v26 = vpop.eup %979  ;;  %997 = vpow2.f32 %v914_v14 }
 0x1fc   : > { %v982_v27 = vpop.eup %981  ;;  %v634_v32 = vadd.f32 1.0, %v980_v26  ;;  %999 = vpow2.f32 %v915_v21 }
 0x1fd   : > { %v984_v33 = vpop.eup %983  ;;  %v635_v38 = vadd.f32 1.0, %v982_v27  ;;  %1001 = vpow2.f32 %v907_v20 }
 0x1fe   : > { %v986_v39 = vpop.eup %985  ;;  %1003 = vrcp.f32 %v634_v32  ;;  %v636_v44 = vadd.f32 1.0, %v984_v33  ;;  %v485_v45 = vpop.f32.mrb[8].mxu1 }
 0x1ff   : > { %1005 = vrcp.f32 %v635_v38  ;;  %v637_v48 = vadd.f32 1.0, %v986_v39  ;;  %v916_v49 = vmul.f32 -1.442695, %v485_v45  ;;  %v487_v50 = vpop.f32.mrb[9].mxu1  ;;  %v988_v51 = vpop.eup %987 }
 0x200   : > { %1007 = vrcp.f32 %v636_v44  ;;  %v917_v52 = vmul.f32 -1.442695, %v487_v50  ;;  %v489_v53 = vpop.f32.mrb[10].mxu1  ;;  %v1356_v54 = vpop.eup %989 }
 0x201   : > { %1009 = vrcp.f32 %v637_v48  ;;  %v918_v55 = vmul.f32 -1.442695, %v489_v53  ;;  %v491_v56 = vpop.f32.mrb[11].mxu1  ;;  %v1358_v57 = vpop.eup %991 }
 0x202   : > { %1011 = vpow2.f32 %v916_v49  ;;  %v919_v58 = vmul.f32 -1.442695, %v491_v56  ;;  %v630_v49 = vadd.f32 1.0, %v988_v51 }
 0x203   : > { %v994_v0 = vpop.eup %993  ;;  %1013 = vpow2.f32 %v917_v52 }
 0x204   : > { %v996_v59 = vpop.eup %995  ;;  %v638_v60 = vadd.f32 1.0, %v994_v0  ;;  %1015 = vpow2.f32 %v918_v55 }
 0x205   : > { %v998_v61 = vpop.eup %997  ;;  %v639_v62 = vadd.f32 1.0, %v996_v59  ;;  %1017 = vpow2.f32 %v919_v58 }
 0x206   : > { %v1000_v63 = vpop.eup %999  ;;  %1019 = vrcp.f32 %v638_v60  ;;  %v640_v4 = vadd.f32 1.0, %v998_v61  ;;  %v495_v8 = vpop.f32.mrb[12].mxu1 }
 0x207   : > { %v1360_v9 = vpop.eup %1001  ;;  %1021 = vrcp.f32 %v639_v62  ;;  %v641_v14 = vadd.f32 1.0, %v1000_v63  ;;  %v920_v15 = vmul.f32 -1.442695, %v495_v8  ;;  %v497_v20 = vpop.f32.mrb[13].mxu1 }
 0x208   : > { %v1004_v21 = vpop.eup %1003  ;;  %1023 = vrcp.f32 %v640_v4  ;;  %v921_v26 = vmul.f32 -1.442695, %v497_v20  ;;  %v499_v27 = vpop.f32.mrb[14].mxu1 }
 0x209   : > { %v1006_v32 = vpop.eup %1005  ;;  %v730_v33 = vmul.f32 %v1004_v21, %v1207_v10  ;;  %1025 = vrcp.f32 %v641_v14  ;;  %v922_v38 = vmul.f32 -1.442695, %v499_v27  ;;  %v501_v39 = vpop.f32.mrb[15].mxu1 }
 0x20a   : > { %v1008_v44 = vpop.eup %1007  ;;  %v731_v45 = vmul.f32 %v1006_v32, %v1197_v6  ;;  %1027 = vpow2.f32 %v920_v15  ;;  %v923_v48 = vmul.f32 -1.442695, %v501_v39 }
 0x20b   : > { %v1010_v50 = vpop.eup %1009  ;;  %762 = vst [vmem:[%s1367_s20 + $0x20] sm:$0xff] %v730_v33  ;;  %v732_v52 = vmul.f32 %v1008_v44, %v1210_v11  ;;  %1029 = vpow2.f32 %v921_v26 }
 0x20c   : > { %v1012_v53 = vpop.eup %1011  ;;  %763 = vst [vmem:[%s1367_s20 + $0x28] sm:$0xff] %v731_v45  ;;  %v733_v10 = vmul.f32 %v1010_v50, %v1200_v7  ;;  %1031 = vpow2.f32 %v922_v38 }
 0x20d   : > { %v1014_v55 = vpop.eup %1013  ;;  %764 = vst [vmem:[%s1367_s20 + $0x30] sm:$0xff] %v732_v52  ;;  %v642_v56 = vadd.f32 1.0, %v1012_v53  ;;  %1033 = vpow2.f32 %v923_v48 }
 0x20e   : > { %v1016_v58 = vpop.eup %1015  ;;  %765 = vst [vmem:[%s1367_s20 + $0x38] sm:$0xff] %v733_v10  ;;  %v643_v6 = vadd.f32 1.0, %v1014_v55  ;;  %v505_v0 = vpop.f32.mrb[16].mxu1  ;;  %1035 = vrcp.f32 %v630_v49 }
 0x20f   : > { %v1018_v51 = vpop.eup %1017  ;;  %1037 = vrcp.f32 %v642_v56  ;;  %v644_v59 = vadd.f32 1.0, %v1016_v58  ;;  %v924_v60 = vmul.f32 -1.442695, %v505_v0  ;;  %v507_v11 = vpop.f32.mrb[17].mxu1 }
 0x210   : > { %v1020_v61 = vpop.eup %1019  ;;  %1039 = vrcp.f32 %v643_v6  ;;  %v645_v62 = vadd.f32 1.0, %v1018_v51  ;;  %v925_v7 = vmul.f32 -1.442695, %v507_v11  ;;  %v509_v63 = vpop.f32.mrb[18].mxu1 }
 0x211   : > { %v1022_v4 = vpop.eup %1021  ;;  %v734_v8 = vmul.f32 %v1020_v61, %v1223_v16  ;;  %1041 = vrcp.f32 %v644_v59  ;;  %v926_v14 = vmul.f32 -1.442695, %v509_v63  ;;  %v511_v15 = vpop.f32.mrb[19].mxu1  ;;  %v631_v61 = vadd.f32 1.0, %v1356_v54 }
 0x212   : > { %v1024_v20 = vpop.eup %1023  ;;  %v735_v21 = vmul.f32 %v1022_v4, %v1213_v12  ;;  %1043 = vrcp.f32 %v645_v62  ;;  %v927_v26 = vmul.f32 -1.442695, %v511_v15 }
 0x213   : > { %v1026_v27 = vpop.eup %1025  ;;  %766 = vst [vmem:[%s1367_s20 + $0x40] sm:$0xff] %v734_v8  ;;  %v736_v32 = vmul.f32 %v1024_v20, %v1226_v17  ;;  %1045 = vpow2.f32 %v924_v60 }
 0x214   : > { %v1028_v33 = vpop.eup %1027  ;;  %767 = vst [vmem:[%s1367_s20 + $0x48] sm:$0xff] %v735_v21  ;;  %v737_v38 = vmul.f32 %v1026_v27, %v1216_v13  ;;  %1047 = vpow2.f32 %v925_v7  ;;  %v633_v27 = vadd.f32 1.0, %v1360_v9 }
 0x215   : > { %v1030_v16 = vpop.eup %1029  ;;  %768 = vst [vmem:[%s1367_s20 + $0x50] sm:$0xff] %v736_v32  ;;  %v646_v39 = vadd.f32 1.0, %v1028_v33  ;;  %1049 = vpow2.f32 %v926_v14 }
 0x216   : > { %v1032_v44 = vpop.eup %1031  ;;  %769 = vst [vmem:[%s1367_s20 + $0x58] sm:$0xff] %v737_v38  ;;  %v647_v12 = vadd.f32 1.0, %v1030_v16  ;;  %1051 = vpow2.f32 %v927_v26  ;;  %v515_v45 = vpop.f32.mrb[20].mxu1 }
 0x217   : > { %v1034_v48 = vpop.eup %1033  ;;  %1053 = vrcp.f32 %v646_v39  ;;  %v648_v49 = vadd.f32 1.0, %v1032_v44  ;;  %v928_v50 = vmul.f32 -1.442695, %v515_v45  ;;  %v517_v17 = vpop.f32.mrb[21].mxu1 }
 0x218   : > { %v1036_v52 = vpop.eup %1035  ;;  %1055 = vrcp.f32 %v647_v12  ;;  %v649_v53 = vadd.f32 1.0, %v1034_v48  ;;  %v929_v13 = vmul.f32 -1.442695, %v517_v17  ;;  %v519_v10 = vpop.f32.mrb[22].mxu1 }
 0x219   : > { %v1038_v55 = vpop.eup %1037  ;;  %1057 = vrcp.f32 %v648_v49  ;;  %v930_v56 = vmul.f32 -1.442695, %v519_v10  ;;  %v521_v58 = vpop.f32.mrb[23].mxu1  ;;  %v726_v6 = vmul.f32 %v1036_v52, %v1189_v3 }
 0x21a   : > { %v1040_v0 = vpop.eup %1039  ;;  %v738_v51 = vmul.f32 %v1038_v55, %v1239_v22  ;;  %1059 = vrcp.f32 %v649_v53  ;;  %v931_v59 = vmul.f32 -1.442695, %v521_v58 }
 0x21b   : > { %v1042_v60 = vpop.eup %1041  ;;  %v739_v11 = vmul.f32 %v1040_v0, %v1229_v18  ;;  %1061 = vpow2.f32 %v928_v50  ;;  %758 = vst [vmem:[%s1367_s20] sm:$0xff] %v726_v6 }
 0x21c   : > { %v1044_v62 = vpop.eup %1043  ;;  %770 = vst [vmem:[%s1367_s20 + $0x60] sm:$0xff] %v738_v51  ;;  %v740_v7 = vmul.f32 %v1042_v60, %v1242_v23  ;;  %1063 = vpow2.f32 %v929_v13  ;;  %v632_v23 = vadd.f32 1.0, %v1358_v57 }
 0x21d   : > { %v1046_v3 = vpop.eup %1045  ;;  %771 = vst [vmem:[%s1367_s20 + $0x68] sm:$0xff] %v739_v11  ;;  %v741_v22 = vmul.f32 %v1044_v62, %v1232_v19  ;;  %1065 = vpow2.f32 %v930_v56 }
 0x21e   : > { %v1048_v63 = vpop.eup %1047  ;;  %772 = vst [vmem:[%s1367_s20 + $0x70] sm:$0xff] %v740_v7  ;;  %v650_v4 = vadd.f32 1.0, %v1046_v3  ;;  %1067 = vpow2.f32 %v931_v59  ;;  %v525_v18 = vpop.f32.mrb[24].mxu1 }
 0x21f   : > { %v1050_v8 = vpop.eup %1049  ;;  %773 = vst [vmem:[%s1367_s20 + $0x78] sm:$0xff] %v741_v22  ;;  %v651_v14 = vadd.f32 1.0, %v1048_v63  ;;  %1069 = vrcp.f32 %v631_v61  ;;  %v527_v54 = vpop.f32.mrb[25].mxu1  ;;  %v932_v16 = vmul.f32 -1.442695, %v525_v18 }
 0x220   : > { %v1052_v15 = vpop.eup %1051  ;;  %1071 = vrcp.f32 %v650_v4  ;;  %v652_v20 = vadd.f32 1.0, %v1050_v8  ;;  %v529_v21 = vpop.f32.mrb[26].mxu1  ;;  %v933_v57 = vmul.f32 -1.442695, %v527_v54 }
 0x221   : > { %v1054_v26 = vpop.eup %1053  ;;  %1073 = vrcp.f32 %v651_v14  ;;  %v653_v19 = vadd.f32 1.0, %v1052_v15  ;;  %v531_v32 = vpop.f32.mrb[27].mxu1  ;;  %v934_v53 = vmul.f32 -1.442695, %v529_v21 }
 0x222   : > { %v1056_v33 = vpop.eup %1055  ;;  %v742_v38 = vmul.f32 %v1054_v26, %v1255_v28  ;;  %1075 = vrcp.f32 %v652_v20  ;;  %v935_v10 = vmul.f32 -1.442695, %v531_v32 }
 0x223   : > { %v1058_v39 = vpop.eup %1057  ;;  %v743_v44 = vmul.f32 %v1056_v33, %v1245_v24  ;;  %1077 = vrcp.f32 %v653_v19 }
 0x224   : > { %v1060_v12 = vpop.eup %1059  ;;  %774 = vst [vmem:[%s1367_s20 + $0x80] sm:$0xff] %v742_v38  ;;  %v744_v45 = vmul.f32 %v1058_v39, %v1258_v29  ;;  %1079 = vrcp.f32 %v632_v23 }
 0x225   : > { %v1062_v48 = vpop.eup %1061  ;;  %775 = vst [vmem:[%s1367_s20 + $0x88] sm:$0xff] %v743_v44  ;;  %v745_v9 = vmul.f32 %v1060_v12, %v1248_v25  ;;  %1081 = vrcp.f32 %v633_v27 }
 0x226   : > { %v1064_v28 = vpop.eup %1063  ;;  %776 = vst [vmem:[%s1367_s20 + $0x90] sm:$0xff] %v744_v45  ;;  %v654_v49 = vadd.f32 1.0, %v1062_v48  ;;  %1083 = vpow2.f32 %v932_v16 }
 0x227   : > { %v1066_v50 = vpop.eup %1065  ;;  %777 = vst [vmem:[%s1367_s20 + $0x98] sm:$0xff] %v745_v9  ;;  %v655_v24 = vadd.f32 1.0, %v1064_v28  ;;  %1085 = vpow2.f32 %v933_v57 }
 0x228   : > { %v1068_v17 = vpop.eup %1067  ;;  %1087 = vrcp.f32 %v654_v49  ;;  %v656_v52 = vadd.f32 1.0, %v1066_v50 }
 0x229   : > { %v1070_v29 = vpop.eup %1069  ;;  %1089 = vrcp.f32 %v655_v24  ;;  %v657_v13 = vadd.f32 1.0, %v1068_v17 }
 0x22a   : > { %v1072_v25 = vpop.eup %1071  ;;  %1091 = vrcp.f32 %v656_v52  ;;  %v727_v55 = vmul.f32 %v1070_v29, %v1183_v1 }
 0x22b   : > { %v1074_v56 = vpop.eup %1073  ;;  %v746_v58 = vmul.f32 %v1072_v25, %v1271_v34  ;;  %1093 = vrcp.f32 %v657_v13 }
 0x22c   : > { %v1076_v6 = vpop.eup %1075  ;;  %v747_v0 = vmul.f32 %v1074_v56, %v1261_v30  ;;  %759 = vst [vmem:[%s1367_s20 + $0x8] sm:$0xff] %v727_v55  ;;  %1095 = vpow2.f32 %v934_v53 }
 0x22d   : > { %v1078_v51 = vpop.eup %1077  ;;  %778 = vst [vmem:[%s1367_s20 + $0xa0] sm:$0xff] %v746_v58  ;;  %v748_v59 = vmul.f32 %v1076_v6, %v1274_v35  ;;  %1097 = vpow2.f32 %v935_v10 }
 0x22e   : > { %v1080_v60 = vpop.eup %1079  ;;  %779 = vst [vmem:[%s1367_s20 + $0xa8] sm:$0xff] %v747_v0  ;;  %v749_v1 = vmul.f32 %v1078_v51, %v1264_v31 }
 0x22f   : > { %v1082_v11 = vpop.eup %1081  ;;  %780 = vst [vmem:[%s1367_s20 + $0xb0] sm:$0xff] %v748_v59  ;;  %v728_v34 = vmul.f32 %v1080_v60, %v1194_v5 }
 0x230   : > { %v1084_v61 = vpop.eup %1083  ;;  %781 = vst [vmem:[%s1367_s20 + $0xb8] sm:$0xff] %v749_v1  ;;  %v729_v30 = vmul.f32 %v1082_v11, %v1186_v2 }
 0x231   : > { %v1086_v62 = vpop.eup %1085  ;;  %760 = vst [vmem:[%s1367_s20 + $0x10] sm:$0xff] %v728_v34  ;;  %v658_v7 = vadd.f32 1.0, %v1084_v61 }
 0x232   : > { %v1088_v3 = vpop.eup %1087  ;;  %761 = vst [vmem:[%s1367_s20 + $0x18] sm:$0xff] %v729_v30  ;;  %v659_v35 = vadd.f32 1.0, %v1086_v62 }
 0x233   : > { %v1090_v22 = vpop.eup %1089  ;;  %v750_v31 = vmul.f32 %v1088_v3, %v1287_v40  ;;  %1099 = vrcp.f32 %v658_v7 }
 0x234   : > { %v1092_v63 = vpop.eup %1091  ;;  %v751_v5 = vmul.f32 %v1090_v22, %v1277_v36  ;;  %1101 = vrcp.f32 %v659_v35 }
 0x235   : > { %v1094_v4 = vpop.eup %1093  ;;  %782 = vst [vmem:[%s1367_s20 + $0xc0] sm:$0xff] %v750_v31  ;;  %v752_v2 = vmul.f32 %v1092_v63, %v1290_v41 }
 0x236   : > { %v1096_v18 = vpop.eup %1095  ;;  %783 = vst [vmem:[%s1367_s20 + $0xc8] sm:$0xff] %v751_v5  ;;  %v753_v8 = vmul.f32 %v1094_v4, %v1280_v37 }
 0x237   : > { %v1098_v14 = vpop.eup %1097  ;;  %784 = vst [vmem:[%s1367_s20 + $0xd0] sm:$0xff] %v752_v2  ;;  %v660_v54 = vadd.f32 1.0, %v1096_v18 }
 0x238   : > { %785 = vst [vmem:[%s1367_s20 + $0xd8] sm:$0xff] %v753_v8  ;;  %v661_v40 = vadd.f32 1.0, %v1098_v14 }
 0x239   : > { %1103 = vrcp.f32 %v660_v54 }
 0x23a   : > { %1105 = vrcp.f32 %v661_v40 }
 0x23d   : > { %v1100_v36 = vpop.eup %1099 }
 0x23e   : > { %v1102_v15 = vpop.eup %1101  ;;  %v754_v20 = vmul.f32 %v1100_v36, %v1303_v46 }
 0x23f   : > { %v755_v41 = vmul.f32 %v1102_v15, %v1293_v42 }
 0x240   : > { %786 = vst [vmem:[%s1367_s20 + $0xe0] sm:$0xff] %v754_v20 }
 0x241   : > { %787 = vst [vmem:[%s1367_s20 + $0xe8] sm:$0xff] %v755_v41 }
 0x243   : > { %v1104_v23 = vpop.eup %1103 }
 0x244   : > { %v1106_v21 = vpop.eup %1105  ;;  %v756_v37 = vmul.f32 %v1104_v23, %v1306_v47 }
 0x245   : > { %v757_v26 = vmul.f32 %v1106_v21, %v1296_v43 }
 0x246   : > { %788 = vst [vmem:[%s1367_s20 + $0xf0] sm:$0xff] %v756_v37 }
 0x247   : > { %789 = vst [vmem:[%s1367_s20 + $0xf8] sm:$0xff] %v757_v26 }
 0x248 PF: > { %s13_s14 = sadd.s32 1, %s1129_s14   ;;  %s1449_s12 = smov %s1125_s13 }
 0x249   : > { %p10_p5 = scmp.ge.s32.totalorder %s13_s14, 4   ;;  %s1450_s13 = smov %s1452_s15 }
 0x24b   :  { %12 = sbr.rel (!%p10_p5) target bundleno = 2 (0x2), region = 62 }

</bundles_post_ra>
